<compile_context>
chip_gen: v7x
topology: tpu7x:2x2x1
jax: 0.10.0
libtpu: 0.0.40
codegen_flags: <defaults>
</compile_context>

<pallas_src>
import functools

import jax
import jax.numpy as jnp
import numpy as np
from jax.experimental import pallas as pl
from jax.experimental.pallas import tpu as pltpu


def convlstm_cell_kernel(x_ref, h_ref, c_ref, w_ref, b_ref,
                         h_out_ref, c_out_ref,
                         *, H, W, KH, KW, Cx, Hd):
    # x_ref : (1, Cx, H*W)     input, channel-on-sublane / spatial-on-lane
    # h_ref : (1, Hd, H*W)     hidden state
    # c_ref : (1, Hd, H*W)     cell state
    # w_ref : (4*Hd, KH*KW*Cin) flattened conv weight (im2col row order)
    # b_ref : (4*Hd, 1)        conv bias
    # h_out_ref / c_out_ref: (1, Hd, H*W)
    Cin = Cx + Hd
    HW = H * W
    ph, pw = KH // 2, KW // 2

    x = x_ref[0].astype(jnp.float32)                      # (Cx, HW)
    h = h_ref[0].astype(jnp.float32)                      # (Hd, HW)
    combined = jnp.concatenate([x, h], axis=0)            # (Cin, HW)

    # Lane-tile-aligned zero padding on both sides of the flat spatial axis.
    # The left/right zero bands implement the H-direction "same" padding
    # for the shifted slices below.
    pad = ((ph * W + pw + 127) // 128) * 128
    if pad > 0:
        zeros = jnp.zeros((Cin, pad), jnp.float32)
        padded = jnp.concatenate([zeros, combined, zeros], axis=1)
    else:
        padded = combined                                 # 1x1 kernel case

    # w-position of every flat spatial index, for masking W wrap-around.
    wpos = jax.lax.broadcasted_iota(jnp.int32, (1, HW), 1) % W

    # Build the im2col patch: rows ordered (kh, kw, c) to match w_ref columns.
    taps = []
    for kh in range(KH):
        for kw in range(KW):
            dw = kw - pw
            start = pad - (ph * W + pw) + kh * W + kw
            sl = padded[:, start:start + HW]              # (Cin, HW) lane shift
            if dw != 0:
                valid = (wpos + dw >= 0) & (wpos + dw < W)
                sl = jnp.where(valid, sl, 0.0)
            taps.append(sl)
    patch = jnp.concatenate(taps, axis=0)                 # (KH*KW*Cin, HW)

    # Single fused MXU matmul: (4*Hd, K=KH*KW*Cin) @ (K, HW) -> (4*Hd, HW).
    acc = jnp.dot(w_ref[...].astype(jnp.float32), patch,
                  preferred_element_type=jnp.float32)
    acc = acc + b_ref[...]                                # (4*Hd,1) broadcast

    # Gate split matches torch.split(combined_conv, hidden_dim, dim=1):
    # [i, f, o, g].  All slices are sublane-aligned (multiples of Hd=8).
    i = jax.nn.sigmoid(acc[0 * Hd:1 * Hd])
    f = jax.nn.sigmoid(acc[1 * Hd:2 * Hd])
    o = jax.nn.sigmoid(acc[2 * Hd:3 * Hd])
    g = jnp.tanh(acc[3 * Hd:4 * Hd])

    c_cur = c_ref[0].astype(jnp.float32)                  # (Hd, HW)
    c_next = f * c_cur + i * g
    h_next = o * jnp.tanh(c_next)

    h_out_ref[0] = h_next.astype(h_out_ref.dtype)
    c_out_ref[0] = c_next.astype(c_out_ref.dtype)


def convlstm_cell(x_nchw, h_nchw, c_nchw, weight_oihw, bias, kernel_size):
    """ConvLSTMCell.forward. Inputs/outputs are NCHW to match PyTorch."""
    B, Cx, H, W = x_nchw.shape
    Hd = h_nchw.shape[1]
    KH, KW = kernel_size
    Cin = Cx + Hd
    HW = H * W

    # Free reshapes (bitcasts): NCHW -> (B, C, H*W).  No transposes needed.
    x = x_nchw.reshape(B, Cx, HW)
    h = h_nchw.reshape(B, Hd, HW)
    c = c_nchw.reshape(B, Hd, HW)

    # Conv weight (O, I, KH, KW) -> (O, KH*KW*I), matching the im2col row
    # order (kh, kw, c) used inside the kernel.  Tiny one-time transform.
    w_flat = jnp.transpose(weight_oihw, (0, 2, 3, 1)).reshape(
        4 * Hd, KH * KW * Cin)
    b2 = bias.reshape(4 * Hd, 1)

    kernel = functools.partial(convlstm_cell_kernel,
                               H=H, W=W, KH=KH, KW=KW, Cx=Cx, Hd=Hd)

    h_next, c_next = pl.pallas_call(
        kernel,
        out_shape=(jax.ShapeDtypeStruct((B, Hd, HW), x_nchw.dtype),
                   jax.ShapeDtypeStruct((B, Hd, HW), x_nchw.dtype)),
        grid=(B,),
        in_specs=[
            pl.BlockSpec((1, Cx, HW), lambda b: (b, 0, 0)),
            pl.BlockSpec((1, Hd, HW), lambda b: (b, 0, 0)),
            pl.BlockSpec((1, Hd, HW), lambda b: (b, 0, 0)),
            pl.BlockSpec((4 * Hd, KH * KW * Cin), lambda b: (0, 0)),
            pl.BlockSpec((4 * Hd, 1), lambda b: (0, 0)),
        ],
        out_specs=(pl.BlockSpec((1, Hd, HW), lambda b: (b, 0, 0)),
                   pl.BlockSpec((1, Hd, HW), lambda b: (b, 0, 0))),
        compiler_params=pltpu.CompilerParams(
            dimension_semantics=("parallel",)),
    )(x, h, c, w_flat, b2)

    # Free reshapes back to NCHW (PyTorch convention).
    return (h_next.reshape(B, Hd, H, W), c_next.reshape(B, Hd, H, W))


def convlstm_cell_reference(x, h, c, w, b, kernel_size):
    """Pure-JAX reference (mirrors the PyTorch forward exactly)."""
    KH, KW = kernel_size
    combined = jnp.concatenate([x, h], axis=1)
    out = jax.lax.conv_general_dilated(
        combined, w, window_strides=(1, 1),
        padding=[(KH // 2, KH // 2), (KW // 2, KW // 2)],
        dimension_numbers=("NCHW", "OIHW", "NCHW"))
    out = out + b[None, :, None, None]
    cc_i, cc_f, cc_o, cc_g = jnp.split(out, 4, axis=1)
    i = jax.nn.sigmoid(cc_i)
    f = jax.nn.sigmoid(cc_f)
    o = jax.nn.sigmoid(cc_o)
    g = jnp.tanh(cc_g)
    c_next = f * c + i * g
    h_next = o * jnp.tanh(c_next)
    return h_next, c_next


if __name__ == "__main__":
    # Module config (small, consistent with ConvLSTMCell.__init__):
    input_dim = 4
    hidden_dim = 8
    kernel_size = (3, 3)
    B, H, W = 2, 16, 16

    key = jax.random.PRNGKey(0)
    kx, kh, kc, kw_, kb = jax.random.split(key, 5)

    x = jax.random.normal(kx, (B, input_dim, H, W), jnp.float32)
    h_cur = jax.random.normal(kh, (B, hidden_dim, H, W), jnp.float32)
    c_cur = jax.random.normal(kc, (B, hidden_dim, H, W), jnp.float32)

    # Deterministic synthetic conv params (nn.Conv2d weight: OIHW, bias: O).
    cin = input_dim + hidden_dim
    cout = 4 * hidden_dim
    weight = 0.1 * jax.random.normal(kw_, (cout, cin, *kernel_size), jnp.float32)
    bias = 0.1 * jax.random.normal(kb, (cout,), jnp.float32)

    h_next, c_next = convlstm_cell(x, h_cur, c_cur, weight, bias, kernel_size)
    jax.block_until_ready((h_next, c_next))

    h_ref, c_ref = convlstm_cell_reference(x, h_cur, c_cur, weight, bias, kernel_size)
    np.testing.assert_allclose(np.asarray(h_next), np.asarray(h_ref),
                               rtol=1e-5, atol=1e-5)
    np.testing.assert_allclose(np.asarray(c_next), np.asarray(c_ref),
                               rtol=1e-5, atol=1e-5)

    print("KERNEL_OK")
</pallas_src>

<mosaic_0001>
module attributes {stable_mosaic.version = 11 : i64} {
  func.func @convlstm_cell_kernel(%arg0: i32, %arg1: memref<1x4x256xf32, #tpu.memory_space<vmem>>, %arg2: memref<1x8x256xf32, #tpu.memory_space<vmem>>, %arg3: memref<1x8x256xf32, #tpu.memory_space<vmem>>, %arg4: memref<32x108xf32, #tpu.memory_space<vmem>>, %arg5: memref<32x1xf32, #tpu.memory_space<vmem>>, %arg6: memref<1x8x256xf32, #tpu.memory_space<vmem>>, %arg7: memref<1x8x256xf32, #tpu.memory_space<vmem>>) attributes {dimension_semantics = [#tpu.dimension_semantics<parallel>], iteration_bounds = array<i64: 2>, scalar_prefetch = 0 : i64, scratch_operands = 0 : i64, tpu.core_type = #tpu.core_type<tc>, window_params = [{transform_indices = @transform_0, window_bounds = array<i64: 1, 4, 256>}, {transform_indices = @transform_1, window_bounds = array<i64: 1, 8, 256>}, {transform_indices = @transform_2, window_bounds = array<i64: 1, 8, 256>}, {pipeline_mode = #tpu.pipeline_mode<synchronous>, transform_indices = @transform_3, window_bounds = array<i64: 32, 108>}, {pipeline_mode = #tpu.pipeline_mode<synchronous>, transform_indices = @transform_4, window_bounds = array<i64: 32, 1>}, {transform_indices = @transform_5, window_bounds = array<i64: 1, 8, 256>}, {transform_indices = @transform_6, window_bounds = array<i64: 1, 8, 256>}]} {
    %c0 = arith.constant 0 : index
    %c0_0 = arith.constant 0 : index
    %c0_1 = arith.constant 0 : index
    %0 = vector.load %arg1[%c0, %c0_0, %c0_1] : memref<1x4x256xf32, #tpu.memory_space<vmem>>, vector<1x4x256xf32>
    %1 = vector.shape_cast %0 : vector<1x4x256xf32> to vector<4x256xf32>
    %c0_2 = arith.constant 0 : index
    %c0_3 = arith.constant 0 : index
    %c0_4 = arith.constant 0 : index
    %2 = vector.load %arg2[%c0_2, %c0_3, %c0_4] : memref<1x8x256xf32, #tpu.memory_space<vmem>>, vector<1x8x256xf32>
    %3 = vector.shape_cast %2 : vector<1x8x256xf32> to vector<8x256xf32>
    %4 = tpu.concatenate %1, %3 in 0 : vector<4x256xf32>, vector<8x256xf32> -> vector<12x256xf32>
    %cst = arith.constant 0.000000e+00 : f32
    %5 = vector.broadcast %cst : f32 to vector<12x128xf32>
    %6 = tpu.concatenate %5, %4, %5 in 1 : vector<12x128xf32>, vector<12x256xf32>, vector<12x128xf32> -> vector<12x512xf32>
    %7 = tpu.iota {dimensions = array<i32: 1>} : vector<1x256xi32>
    %c16_i32 = arith.constant 16 : i32
    %c0_i32 = arith.constant 0 : i32
    %8 = arith.cmpi eq, %c16_i32, %c0_i32 : i32
    %c1_i32 = arith.constant 1 : i32
    %9 = arith.select %8, %c1_i32, %c16_i32 : i32
    %10 = vector.broadcast %9 : i32 to vector<1x256xi32>
    %11 = arith.remsi %7, %10 : vector<1x256xi32>
    %c0_i32_5 = arith.constant 0 : i32
    %12 = vector.broadcast %c0_i32_5 : i32 to vector<1x256xi32>
    %13 = arith.cmpi ne, %11, %12 : vector<1x256xi32>
    %c0_i32_6 = arith.constant 0 : i32
    %14 = vector.broadcast %c0_i32_6 : i32 to vector<1x256xi32>
    %15 = arith.cmpi slt, %11, %14 : vector<1x256xi32>
    %c0_i32_7 = arith.constant 0 : i32
    %16 = arith.cmpi slt, %9, %c0_i32_7 : i32
    %17 = vector.broadcast %16 : i1 to vector<1x256xi1>
    %18 = vector.broadcast %17 : vector<1x256xi1> to vector<1x256xi1>
    %19 = arith.xori %15, %18 : vector<1x256xi1>
    %20 = arith.andi %19, %13 : vector<1x256xi1>
    %21 = vector.broadcast %9 : i32 to vector<1x256xi32>
    %22 = arith.addi %11, %21 : vector<1x256xi32>
    %23 = arith.select %20, %22, %11 : vector<1x256xi1>, vector<1x256xi32>
    %24 = vector.extract_strided_slice %6 {offsets = [0, 111], sizes = [12, 256], strides = [1, 1]} : vector<12x512xf32> to vector<12x256xf32>
    %c-1_i32 = arith.constant -1 : i32
    %25 = vector.broadcast %c-1_i32 : i32 to vector<1x256xi32>
    %26 = arith.addi %23, %25 : vector<1x256xi32>
    %c0_i32_8 = arith.constant 0 : i32
    %27 = vector.broadcast %c0_i32_8 : i32 to vector<1x256xi32>
    %28 = arith.cmpi sge, %26, %27 : vector<1x256xi32>
    %c-1_i32_9 = arith.constant -1 : i32
    %29 = vector.broadcast %c-1_i32_9 : i32 to vector<1x256xi32>
    %30 = arith.addi %23, %29 : vector<1x256xi32>
    %c16_i32_10 = arith.constant 16 : i32
    %31 = vector.broadcast %c16_i32_10 : i32 to vector<1x256xi32>
    %32 = arith.cmpi slt, %30, %31 : vector<1x256xi32>
    %33 = arith.andi %28, %32 : vector<1x256xi1>
    %cst_11 = arith.constant 0.000000e+00 : f32
    %34 = vector.shape_cast %33 : vector<1x256xi1> to vector<1x256xi1>
    %35 = vector.broadcast %34 : vector<1x256xi1> to vector<12x256xi1>
    %36 = vector.broadcast %cst_11 : f32 to vector<12x256xf32>
    %37 = arith.select %35, %24, %36 : vector<12x256xi1>, vector<12x256xf32>
    %38 = vector.extract_strided_slice %6 {offsets = [0, 112], sizes = [12, 256], strides = [1, 1]} : vector<12x512xf32> to vector<12x256xf32>
    %39 = vector.extract_strided_slice %6 {offsets = [0, 113], sizes = [12, 256], strides = [1, 1]} : vector<12x512xf32> to vector<12x256xf32>
    %c1_i32_12 = arith.constant 1 : i32
    %40 = vector.broadcast %c1_i32_12 : i32 to vector<1x256xi32>
    %41 = arith.addi %23, %40 : vector<1x256xi32>
    %c0_i32_13 = arith.constant 0 : i32
    %42 = vector.broadcast %c0_i32_13 : i32 to vector<1x256xi32>
    %43 = arith.cmpi sge, %41, %42 : vector<1x256xi32>
    %c1_i32_14 = arith.constant 1 : i32
    %44 = vector.broadcast %c1_i32_14 : i32 to vector<1x256xi32>
    %45 = arith.addi %23, %44 : vector<1x256xi32>
    %c16_i32_15 = arith.constant 16 : i32
    %46 = vector.broadcast %c16_i32_15 : i32 to vector<1x256xi32>
    %47 = arith.cmpi slt, %45, %46 : vector<1x256xi32>
    %48 = arith.andi %43, %47 : vector<1x256xi1>
    %cst_16 = arith.constant 0.000000e+00 : f32
    %49 = vector.shape_cast %48 : vector<1x256xi1> to vector<1x256xi1>
    %50 = vector.broadcast %49 : vector<1x256xi1> to vector<12x256xi1>
    %51 = vector.broadcast %cst_16 : f32 to vector<12x256xf32>
    %52 = arith.select %50, %39, %51 : vector<12x256xi1>, vector<12x256xf32>
    %53 = vector.extract_strided_slice %6 {offsets = [0, 127], sizes = [12, 256], strides = [1, 1]} : vector<12x512xf32> to vector<12x256xf32>
    %c-1_i32_17 = arith.constant -1 : i32
    %54 = vector.broadcast %c-1_i32_17 : i32 to vector<1x256xi32>
    %55 = arith.addi %23, %54 : vector<1x256xi32>
    %c0_i32_18 = arith.constant 0 : i32
    %56 = vector.broadcast %c0_i32_18 : i32 to vector<1x256xi32>
    %57 = arith.cmpi sge, %55, %56 : vector<1x256xi32>
    %c-1_i32_19 = arith.constant -1 : i32
    %58 = vector.broadcast %c-1_i32_19 : i32 to vector<1x256xi32>
    %59 = arith.addi %23, %58 : vector<1x256xi32>
    %c16_i32_20 = arith.constant 16 : i32
    %60 = vector.broadcast %c16_i32_20 : i32 to vector<1x256xi32>
    %61 = arith.cmpi slt, %59, %60 : vector<1x256xi32>
    %62 = arith.andi %57, %61 : vector<1x256xi1>
    %cst_21 = arith.constant 0.000000e+00 : f32
    %63 = vector.shape_cast %62 : vector<1x256xi1> to vector<1x256xi1>
    %64 = vector.broadcast %63 : vector<1x256xi1> to vector<12x256xi1>
    %65 = vector.broadcast %cst_21 : f32 to vector<12x256xf32>
    %66 = arith.select %64, %53, %65 : vector<12x256xi1>, vector<12x256xf32>
    %67 = vector.extract_strided_slice %6 {offsets = [0, 128], sizes = [12, 256], strides = [1, 1]} : vector<12x512xf32> to vector<12x256xf32>
    %68 = vector.extract_strided_slice %6 {offsets = [0, 129], sizes = [12, 256], strides = [1, 1]} : vector<12x512xf32> to vector<12x256xf32>
    %c1_i32_22 = arith.constant 1 : i32
    %69 = vector.broadcast %c1_i32_22 : i32 to vector<1x256xi32>
    %70 = arith.addi %23, %69 : vector<1x256xi32>
    %c0_i32_23 = arith.constant 0 : i32
    %71 = vector.broadcast %c0_i32_23 : i32 to vector<1x256xi32>
    %72 = arith.cmpi sge, %70, %71 : vector<1x256xi32>
    %c1_i32_24 = arith.constant 1 : i32
    %73 = vector.broadcast %c1_i32_24 : i32 to vector<1x256xi32>
    %74 = arith.addi %23, %73 : vector<1x256xi32>
    %c16_i32_25 = arith.constant 16 : i32
    %75 = vector.broadcast %c16_i32_25 : i32 to vector<1x256xi32>
    %76 = arith.cmpi slt, %74, %75 : vector<1x256xi32>
    %77 = arith.andi %72, %76 : vector<1x256xi1>
    %cst_26 = arith.constant 0.000000e+00 : f32
    %78 = vector.shape_cast %77 : vector<1x256xi1> to vector<1x256xi1>
    %79 = vector.broadcast %78 : vector<1x256xi1> to vector<12x256xi1>
    %80 = vector.broadcast %cst_26 : f32 to vector<12x256xf32>
    %81 = arith.select %79, %68, %80 : vector<12x256xi1>, vector<12x256xf32>
    %82 = vector.extract_strided_slice %6 {offsets = [0, 143], sizes = [12, 256], strides = [1, 1]} : vector<12x512xf32> to vector<12x256xf32>
    %c-1_i32_27 = arith.constant -1 : i32
    %83 = vector.broadcast %c-1_i32_27 : i32 to vector<1x256xi32>
    %84 = arith.addi %23, %83 : vector<1x256xi32>
    %c0_i32_28 = arith.constant 0 : i32
    %85 = vector.broadcast %c0_i32_28 : i32 to vector<1x256xi32>
    %86 = arith.cmpi sge, %84, %85 : vector<1x256xi32>
    %c-1_i32_29 = arith.constant -1 : i32
    %87 = vector.broadcast %c-1_i32_29 : i32 to vector<1x256xi32>
    %88 = arith.addi %23, %87 : vector<1x256xi32>
    %c16_i32_30 = arith.constant 16 : i32
    %89 = vector.broadcast %c16_i32_30 : i32 to vector<1x256xi32>
    %90 = arith.cmpi slt, %88, %89 : vector<1x256xi32>
    %91 = arith.andi %86, %90 : vector<1x256xi1>
    %cst_31 = arith.constant 0.000000e+00 : f32
    %92 = vector.shape_cast %91 : vector<1x256xi1> to vector<1x256xi1>
    %93 = vector.broadcast %92 : vector<1x256xi1> to vector<12x256xi1>
    %94 = vector.broadcast %cst_31 : f32 to vector<12x256xf32>
    %95 = arith.select %93, %82, %94 : vector<12x256xi1>, vector<12x256xf32>
    %96 = vector.extract_strided_slice %6 {offsets = [0, 144], sizes = [12, 256], strides = [1, 1]} : vector<12x512xf32> to vector<12x256xf32>
    %97 = vector.extract_strided_slice %6 {offsets = [0, 145], sizes = [12, 256], strides = [1, 1]} : vector<12x512xf32> to vector<12x256xf32>
    %c1_i32_32 = arith.constant 1 : i32
    %98 = vector.broadcast %c1_i32_32 : i32 to vector<1x256xi32>
    %99 = arith.addi %23, %98 : vector<1x256xi32>
    %c0_i32_33 = arith.constant 0 : i32
    %100 = vector.broadcast %c0_i32_33 : i32 to vector<1x256xi32>
    %101 = arith.cmpi sge, %99, %100 : vector<1x256xi32>
    %c1_i32_34 = arith.constant 1 : i32
    %102 = vector.broadcast %c1_i32_34 : i32 to vector<1x256xi32>
    %103 = arith.addi %23, %102 : vector<1x256xi32>
    %c16_i32_35 = arith.constant 16 : i32
    %104 = vector.broadcast %c16_i32_35 : i32 to vector<1x256xi32>
    %105 = arith.cmpi slt, %103, %104 : vector<1x256xi32>
    %106 = arith.andi %101, %105 : vector<1x256xi1>
    %cst_36 = arith.constant 0.000000e+00 : f32
    %107 = vector.shape_cast %106 : vector<1x256xi1> to vector<1x256xi1>
    %108 = vector.broadcast %107 : vector<1x256xi1> to vector<12x256xi1>
    %109 = vector.broadcast %cst_36 : f32 to vector<12x256xf32>
    %110 = arith.select %108, %97, %109 : vector<12x256xi1>, vector<12x256xf32>
    %111 = tpu.concatenate %37, %38, %52, %66, %67, %81, %95, %96, %110 in 0 : vector<12x256xf32>, vector<12x256xf32>, vector<12x256xf32>, vector<12x256xf32>, vector<12x256xf32>, vector<12x256xf32>, vector<12x256xf32>, vector<12x256xf32>, vector<12x256xf32> -> vector<108x256xf32>
    %c0_37 = arith.constant 0 : index
    %c0_38 = arith.constant 0 : index
    %112 = vector.load %arg4[%c0_37, %c0_38] : memref<32x108xf32, #tpu.memory_space<vmem>>, vector<32x108xf32>
    %cst_39 = arith.constant dense<0.000000e+00> : vector<32x256xf32>
    %113 = tpu.matmul %112, %111, %cst_39 {dimension_numbers = #tpu.dot_dimension_numbers<[1], [0], [0], [1], [0, 0, 1, 1], [], []>} : vector<32x108xf32>, vector<108x256xf32>, vector<32x256xf32> -> vector<32x256xf32>
    %c0_40 = arith.constant 0 : index
    %c0_41 = arith.constant 0 : index
    %114 = vector.load %arg5[%c0_40, %c0_41] : memref<32x1xf32, #tpu.memory_space<vmem>>, vector<32x1xf32>
    %115 = vector.broadcast %114 : vector<32x1xf32> to vector<32x256xf32>
    %116 = arith.addf %113, %115 : vector<32x256xf32>
    %117 = vector.extract_strided_slice %116 {offsets = [0, 0], sizes = [8, 256], strides = [1, 1]} : vector<32x256xf32> to vector<8x256xf32>
    %118 = arith.negf %117 : vector<8x256xf32>
    %119 = math.exp %118 : vector<8x256xf32>
    %cst_42 = arith.constant 1.000000e+00 : f32
    %120 = vector.broadcast %cst_42 : f32 to vector<8x256xf32>
    %121 = arith.addf %120, %119 : vector<8x256xf32>
    %122 = arith.divf %120, %121 : vector<8x256xf32>
    %123 = vector.extract_strided_slice %116 {offsets = [8, 0], sizes = [8, 256], strides = [1, 1]} : vector<32x256xf32> to vector<8x256xf32>
    %124 = arith.negf %123 : vector<8x256xf32>
    %125 = math.exp %124 : vector<8x256xf32>
    %cst_43 = arith.constant 1.000000e+00 : f32
    %126 = vector.broadcast %cst_43 : f32 to vector<8x256xf32>
    %127 = arith.addf %126, %125 : vector<8x256xf32>
    %128 = arith.divf %126, %127 : vector<8x256xf32>
    %129 = vector.extract_strided_slice %116 {offsets = [16, 0], sizes = [8, 256], strides = [1, 1]} : vector<32x256xf32> to vector<8x256xf32>
    %130 = arith.negf %129 : vector<8x256xf32>
    %131 = math.exp %130 : vector<8x256xf32>
    %cst_44 = arith.constant 1.000000e+00 : f32
    %132 = vector.broadcast %cst_44 : f32 to vector<8x256xf32>
    %133 = arith.addf %132, %131 : vector<8x256xf32>
    %134 = arith.divf %132, %133 : vector<8x256xf32>
    %135 = vector.extract_strided_slice %116 {offsets = [24, 0], sizes = [8, 256], strides = [1, 1]} : vector<32x256xf32> to vector<8x256xf32>
    %136 = math.tanh %135 : vector<8x256xf32>
    %c0_45 = arith.constant 0 : index
    %c0_46 = arith.constant 0 : index
    %c0_47 = arith.constant 0 : index
    %137 = vector.load %arg3[%c0_45, %c0_46, %c0_47] : memref<1x8x256xf32, #tpu.memory_space<vmem>>, vector<1x8x256xf32>
    %138 = vector.shape_cast %137 : vector<1x8x256xf32> to vector<8x256xf32>
    %139 = arith.mulf %128, %138 : vector<8x256xf32>
    %140 = arith.mulf %122, %136 : vector<8x256xf32>
    %141 = arith.addf %139, %140 : vector<8x256xf32>
    %142 = math.tanh %141 : vector<8x256xf32>
    %143 = arith.mulf %134, %142 : vector<8x256xf32>
    %c0_48 = arith.constant 0 : index
    %c0_49 = arith.constant 0 : index
    %c0_50 = arith.constant 0 : index
    %144 = vector.load %arg6[%c0_48, %c0_49, %c0_50] : memref<1x8x256xf32, #tpu.memory_space<vmem>>, vector<1x8x256xf32>
    %145 = vector.shape_cast %144 : vector<1x8x256xf32> to vector<8x256xf32>
    %146 = vector.shape_cast %143 : vector<8x256xf32> to vector<1x8x256xf32>
    tpu.vector_store %arg6[%c0_48, %c0_49, %c0_50], %146 {strides = array<i32>} : memref<1x8x256xf32, #tpu.memory_space<vmem>>, vector<1x8x256xf32>,
    %c0_51 = arith.constant 0 : index
    %c0_52 = arith.constant 0 : index
    %c0_53 = arith.constant 0 : index
    %147 = vector.load %arg7[%c0_51, %c0_52, %c0_53] : memref<1x8x256xf32, #tpu.memory_space<vmem>>, vector<1x8x256xf32>
    %148 = vector.shape_cast %147 : vector<1x8x256xf32> to vector<8x256xf32>
    %149 = vector.shape_cast %141 : vector<8x256xf32> to vector<1x8x256xf32>
    tpu.vector_store %arg7[%c0_51, %c0_52, %c0_53], %149 {strides = array<i32>} : memref<1x8x256xf32, #tpu.memory_space<vmem>>, vector<1x8x256xf32>,
    return
  }
  func.func @transform_0(%arg0: i32) -> (i32, i32, i32) {
    %c0_i32 = arith.constant 0 : i32
    %c0_i32_0 = arith.constant 0 : i32
    %c0_i32_1 = arith.constant 0 : i32
    return %arg0, %c0_i32, %c0_i32_0 : i32, i32, i32
  }
  func.func @transform_1(%arg0: i32) -> (i32, i32, i32) {
    %c0_i32 = arith.constant 0 : i32
    %c0_i32_0 = arith.constant 0 : i32
    %c0_i32_1 = arith.constant 0 : i32
    return %arg0, %c0_i32, %c0_i32_0 : i32, i32, i32
  }
  func.func @transform_2(%arg0: i32) -> (i32, i32, i32) {
    %c0_i32 = arith.constant 0 : i32
    %c0_i32_0 = arith.constant 0 : i32
    %c0_i32_1 = arith.constant 0 : i32
    return %arg0, %c0_i32, %c0_i32_0 : i32, i32, i32
  }
  func.func @transform_3(%arg0: i32) -> (i32, i32) {
    %c0_i32 = arith.constant 0 : i32
    %c0_i32_0 = arith.constant 0 : i32
    %c0_i32_1 = arith.constant 0 : i32
    return %c0_i32, %c0_i32_0 : i32, i32
  }
  func.func @transform_4(%arg0: i32) -> (i32, i32) {
    %c0_i32 = arith.constant 0 : i32
    %c0_i32_0 = arith.constant 0 : i32
    %c0_i32_1 = arith.constant 0 : i32
    return %c0_i32, %c0_i32_0 : i32, i32
  }
  func.func @transform_5(%arg0: i32) -> (i32, i32, i32) {
    %c0_i32 = arith.constant 0 : i32
    %c0_i32_0 = arith.constant 0 : i32
    %c0_i32_1 = arith.constant 0 : i32
    return %arg0, %c0_i32, %c0_i32_0 : i32, i32, i32
  }
  func.func @transform_6(%arg0: i32) -> (i32, i32, i32) {
    %c0_i32 = arith.constant 0 : i32
    %c0_i32_0 = arith.constant 0 : i32
    %c0_i32_1 = arith.constant 0 : i32
    return %arg0, %c0_i32, %c0_i32_0 : i32, i32, i32
  }
}

</mosaic_0001>

<bundles_post_ra>
// kernel: tpu_custom_call.1
= control target key start
LH: loop header
LB: loop body
LE: loop exit
PB: predicated region body
PF: predicated region fallthrough
CT: control target
= control target key end

     0   :  { %s2048_s0 = inlined_call_operand.hbm [shape: f32[2,4,256], index: 0, kind: input, shape index: {}]   ;;  %s2049_s1 = inlined_call_operand.vmem [shape: f32[2,8,256], index: 1, kind: input, shape index: {}]   ;;  %s2050_s2 = inlined_call_operand.hbm [shape: f32[2,8,256], index: 2, kind: input, shape index: {}]   ;;  %s2051_s3 = inlined_call_operand.hbm [shape: f32[32,108], index: 3, kind: input, shape index: {}]   ;;  %s2052_s4 = inlined_call_operand.vmem [shape: f32[32,1], index: 4, kind: input, shape index: {}]   ;;  %s2053_s5 = inlined_call_operand.hbm [shape: f32[2,8,256], index: 5, kind: output, shape index: {0}]   ;;  %s2054_s6 = inlined_call_operand.hbm [shape: f32[2,8,256], index: 6, kind: output, shape index: {1}]  }
   0x1   :  { %2059 = sst [smem:[#allocation16_spill]] %s2048_s0 }
   0x2   :  { %2060 = sst [smem:[#allocation17_spill]] %s2051_s3 }
   0x3   :  { %12 = vsyncpa [#allocation3], 0 }
   0x4   :  { %14 = vsyncpa [#allocation3 + $0x1], 0 }
   0x5   :  { %15 = vsyncpa [#allocation6], 0 }
   0x6   :  { %17 = vsyncpa [#allocation6 + $0x1], 0 }
   0x7   :  { %18 = vsyncpa [#allocation4], 0 }
   0x8   :  { %20 = vsyncpa [#allocation4 + $0x1], 0 }
   0x9   :  { %21 = vsyncpa [#allocation10], 0 }
   0xa   :  { %23 = vsyncpa [#allocation10 + $0x1], 0  ;;  %s1569_s21 = smov 0   ;;  %s1571_s22 = smov 0  }
   0xb   :  { %s1573_s23 = smov 0   ;;  %s1575_s24 = smov 0  }
   0xc LB: > { %s1590_s25 = sadd.s32 4294967295, %s1514_s24   ;;  %s1014_s26 = sadd.s32 4294967294, %s1514_s24   ;;  %s1514_s24 = sphi %s1575_s24, %s2083_s24   ;;  %s1510_s23 = sphi %s1573_s23, %s2082_s23   ;;  %s1506_s22 = sphi %s1571_s22, %s2081_s22   ;;  %s1502_s21 = sphi %s1569_s21, %s2080_s21  }
   0xd   : > { %p49_p0 = scmp.ne.s32.totalorder %s1506_s22, %s1502_s21  ;;  %p2055_p1 = scmp.eq.s32.totalorder %s1590_s25, 0 }
   0xe   : > { %p173_p3 = scmp.eq.s32.totalorder %s1014_s26, 1  ;;  %p1015_p5 = scmp.ge.s32.totalorder %s1514_s24, 1 }
   0xf   : > { %p1599_p4 = por %p2055_p1, %p49_p0  ;;  %p206_p7 = scmp.lt.s32.totalorder %s1514_s24, 3 }
  0x10   : > { %p1604_p6 = por %p173_p3, %p49_p0  ;;  %s1516_s30 = smov [#allocation7]  }
  0x11   : > { %s2061_s27 = scalar_select %p1599_p4, 1, 0 }
  0x12   : > { %s2062_s28 = scalar_select %p1604_p6, 1, 0 }
  0x13   : > { %p1609_p8 = pnand %p1015_p5, %p206_p7  ;;  %s218_s7 = sshll.u32 %s1516_s30, 4  ;;  %s1613_s7 = int_to_ptr.vmem [resolvable:$true] %s218_s7 }
  0x14   : > { %s1625_s9 = sadd.s32 1, %s1514_s24   ;;  %s36_s10 = sadd.s32 1, %s1510_s23 }
  0x15   : > { %s2063_s29 = scalar_select %p1609_p8, 1, 0 }
  0x16   : > { %p1127_p9 = pneg %p1609_p8  ;;  %s33_s11 = ssub.s32 %s1514_s24, %s1625_s9 }
  0x17   : > { %s2065_s3 = sld [smem:[#allocation17_spill]] }
  0x18   : > { %p1620_p11 = pnand %p1127_p9, %p2055_p1 }
  0x1a   : > { %p1322_p13 = pneg %p1620_p11 }
  0x1d   : > { %s1320_s14 = scalar_lea.hbm %s2065_s3, 512 }
  0x1e   : > { %p1321_p12 = scmp.ne.s32.totalorder %s2065_s3, %s1320_s14  ;;  %p1327_p5 = scmp.lt.u32.totalorder %s1320_s14, %s2065_s3 }
  0x20   : > { %p1323_p0 = pnand %p1322_p13, %p1321_p12 }
  0x22   : > { %p1324_p3 = pneg %p1323_p0 }
  0x24   : > { %p1329_p7 = pnand %p1327_p5, %p1324_p3 }
  0x26   : > { %1332 = shalt.err (!%p1329_p7)
}
  0x27   : > { %s1333_s19 = scalar_lea.vmem %s1613_s7, 512  ;;  %p1341_p2 = scmp.lt.s32.totalorder %s1613_s7, %s1613_s7 }
  0x28   : > { %p1334_p9 = scmp.ne.s32.totalorder %s1613_s7, %s1333_s19  ;;  %p1342_p6 = scmp.lt.s32.totalorder %s1333_s19, %s1333_s19 }
  0x2a   : > { %p1336_p10 = pnand %p1334_p9, %p1322_p13  ;;  %p1343_p4 = por %p1342_p6, %p1341_p2 }
  0x2c   : > { %p1337_p1 = pneg %p1336_p10 }
  0x2e   : > { %p1344_p8 = pnand %p1343_p4, %p1337_p1 }
  0x30   : > { %1347 = shalt.err (!%p1344_p8)
}
  0x31   : > { %s1517_s20 = smov 128   ;;  %s1518_s26 = smov 8  }
  0x32   : > { %1130 = dma.hbm_to_vmem [thread:$0]  (!%p1620_p11), %s2065_s3, 512, %s1613_s7, [#allocation6], %s1517_s20, %s1517_s20, %s1518_s26  }
  0x33   : > { %p34_p1 = scmp.eq.s32.totalorder %s33_s11, 0  ;;  %p43_p2 = scmp.ne.s32.totalorder %s1510_s23, %s1506_s22 }
  0x34   : > { %p44_p4 = scmp.eq.s32.totalorder %s1514_s24, 0  ;;  %p1146_p6 = scmp.lt.s32.totalorder %s1514_s24, 2 }
  0x35   : > { %s1656_s13 = scalar_select %p34_p1, %s1510_s23, %s36_s10  }
  0x36   : > { %p45_p8 = por %p44_p4, %p43_p2  ;;  %p2066_p10 = scmp.eq.s32.totalorder %s1590_s25, 1 }
  0x37   : > { %s1665_s15 = sand.u32 1, %s1510_s23   ;;  %s1060_s8 = sshll.u32 %s1514_s24, 7 }
  0x38   : > { %p1660_p12 = por %p2066_p10, %p43_p2  ;;  %s1018_s16 = sshll.u32 %s1665_s15, 3 }
  0x39   : > { %s2068_s0 = sld [smem:[#allocation16_spill]]  ;;  %s239_s10 = scalar_lea.vmem [#allocation2], %s1018_s16 }
  0x3a   : > { %s2067_s14 = scalar_select %p1660_p12, 1, 0 }
  0x3b   : > { %s247_s18 = sshll.u32 %s239_s10, 4  ;;  %p1674_p11 = pnand %p1146_p6, %p45_p8  ;;  %s1678_s18 = int_to_ptr.vmem [resolvable:$true] %s247_s18 }
  0x3c   : > { %s236_s26 = scalar_lea.sflag [#allocation3], %s1665_s15 }
  0x3d   : > { %p1350_p0 = pneg %p1674_p11 }
  0x3f   : > { %s1672_s11 = scalar_lea.hbm %s2068_s0, %s1060_s8  ;;  %s1353_s16 = scalar_lea.hbm %s2068_s0, 256 }
  0x40   : > { %s1348_s30 = scalar_lea.hbm %s1672_s11, 128  ;;  %p1354_p7 = scmp.lt.u32.totalorder %s1672_s11, %s2068_s0 }
  0x41   : > { %p1349_p13 = scmp.ne.s32.totalorder %s1672_s11, %s1348_s30  ;;  %p1355_p9 = scmp.lt.u32.totalorder %s1353_s16, %s1348_s30 }
  0x42   : > { %p1357_p2 = scmp.lt.u32.totalorder %s1348_s30, %s1672_s11 }
  0x43   : > { %p1351_p3 = pnand %p1350_p0, %p1349_p13  ;;  %p1356_p1 = por %p1355_p9, %p1354_p7 }
  0x45   : > { %p1352_p5 = pneg %p1351_p3  ;;  %p1358_p4 = por %p1357_p2, %p1356_p1 }
  0x47   : > { %p1359_p6 = pnand %p1358_p4, %p1352_p5 }
  0x49   : > { %1362 = shalt.err (!%p1359_p6)
}
  0x4a   : > { %s1363_s10 = scalar_lea.vmem %s1678_s18, 128  ;;  %s1519_s12 = smov [#allocation2]  }
  0x4b   : > { %p1364_p8 = scmp.ne.s32.totalorder %s1678_s18, %s1363_s10  ;;  %s1368_s8 = sshll.u32 %s1519_s12, 4  ;;  %s1369_s8 = int_to_ptr.vmem [resolvable:$false] %s1368_s8 }
  0x4c   : > { %s1370_s7 = scalar_lea.vmem %s1369_s8, 256  ;;  %p1371_p3 = scmp.lt.s32.totalorder %s1678_s18, %s1369_s8 }
  0x4d   : > { %p1366_p10 = pnand %p1364_p8, %p1350_p0  ;;  %p1372_p7 = scmp.lt.s32.totalorder %s1370_s7, %s1363_s10 }
  0x4f   : > { %p1367_p13 = pneg %p1366_p10  ;;  %p1373_p9 = por %p1372_p7, %p1371_p3 }
  0x51   : > { %p1374_p1 = pnand %p1373_p9, %p1367_p13 }
  0x53   : > { %1377 = shalt.err (!%p1374_p1)
}
  0x54   : > { %1134 = dma.hbm_to_vmem [thread:$0]  (!%p1674_p11), %s1672_s11, 128, %s1678_s18, %s236_s26  }
  0x55   : > { %s1021_s30 = sshll.u32 %s1665_s15, 4  ;;  %s1061_s16 = sshll.u32 %s1514_s24, 8 }
  0x56   : > { %s1712_s20 = scalar_lea.hbm %s2050_s2, %s1061_s16  ;;  %s266_s10 = scalar_lea.vmem [#allocation5], %s1021_s30 }
  0x57   : > { %s274_s8 = sshll.u32 %s266_s10, 4  ;;  %s2070_s7 = sand.u32 1, %s1514_s24   ;;  %s275_s8 = int_to_ptr.vmem [resolvable:$true] %s274_s8 }
  0x58   : > { %s263_s0 = scalar_lea.sflag [#allocation6], %s2070_s7  ;;  %s1378_s3 = scalar_lea.hbm %s1712_s20, 256 }
  0x59   : > { %p1379_p5 = scmp.ne.s32.totalorder %s1712_s20, %s1378_s3  ;;  %s1383_s18 = scalar_lea.hbm %s2050_s2, 512 }
  0x5a   : > { %p1384_p6 = scmp.lt.u32.totalorder %s1712_s20, %s2050_s2  ;;  %p1385_p8 = scmp.lt.u32.totalorder %s1383_s18, %s1378_s3 }
  0x5b   : > { %p1381_p2 = pnand %p1379_p5, %p1350_p0  ;;  %p1387_p13 = scmp.lt.u32.totalorder %s1378_s3, %s1712_s20 }
  0x5c   : > { %p1386_p10 = por %p1385_p8, %p1384_p6 }
  0x5d   : > { %p1382_p4 = pneg %p1381_p2 }
  0x5e   : > { %p1388_p3 = por %p1387_p13, %p1386_p10 }
  0x60   : > { %p1389_p7 = pnand %p1388_p3, %p1382_p4 }
  0x62   : > { %1392 = shalt.err (!%p1389_p7)
}
  0x63   : > { %s1393_s30 = scalar_lea.vmem %s275_s8, 256  ;;  %s1520_s17 = smov [#allocation5]  }
  0x64   : > { %p1394_p9 = scmp.ne.s32.totalorder %s275_s8, %s1393_s30  ;;  %s1398_s12 = sshll.u32 %s1520_s17, 4  ;;  %s1399_s12 = int_to_ptr.vmem [resolvable:$false] %s1398_s12 }
  0x65   : > { %s1400_s10 = scalar_lea.vmem %s1399_s12, 512  ;;  %p1401_p2 = scmp.lt.s32.totalorder %s275_s8, %s1399_s12 }
  0x66   : > { %p1396_p1 = pnand %p1394_p9, %p1350_p0  ;;  %p1402_p12 = scmp.lt.s32.totalorder %s1400_s10, %s1393_s30 }
  0x68   : > { %p1397_p5 = pneg %p1396_p1  ;;  %p1403_p6 = por %p1402_p12, %p1401_p2 }
  0x6a   : > { %p1404_p8 = pnand %p1403_p6, %p1397_p5 }
  0x6c   : > { %1407 = shalt.err (!%p1404_p8)
}
  0x6d   : > { %1137 = dma.hbm_to_vmem [thread:$0]  (!%p1674_p11), %s1712_s20, 256, %s275_s8, %s263_s0  }
  0x6e   : > { %p2071_p4 = scmp.ne.s32.totalorder %s2063_s29, 0 }
  0x6f   : > { %s1738_s3 = sand.u32 (!%p2071_p4), 1, %s1506_s22   ;;  %p2072_p0 = scmp.ne.s32.totalorder (!%p2071_p4), %s2061_s27, 0 }
  0x70   : > { %283 = sbr.rel (%p2071_p4) target bundleno = 593 (0x251), region = 40  ;;  %s1025_s7 = sshll.u32 (!%p2071_p4), %s1738_s3, 3 }
  0x71   : > { %s286_s15 = scalar_lea.sflag (!%p2071_p4), [#allocation3], %s1738_s3  ;;  %s289_s11 = scalar_lea.vmem (!%p2071_p4), [#allocation2], %s1025_s7 }
  0x77   : > { %1481 = dma.done.wait (%p2072_p0), %s286_s15, 128  }
  0x78   : > { %1483 = vsyncadd (%p2072_p0), %s286_s15, 4294967168  ;;  %s294_s0 = sand.u32 1, %s1590_s25   ;;  %s1748_s29 = sshll.u32 %s1738_s3, 4 }
  0x79   : > { %s295_s19 = scalar_lea.sflag [#allocation6], %s294_s0  ;;  %s298_s20 = scalar_lea.vmem [#allocation5], %s1748_s29 }
  0x7a   : > { %1485 = dma.done.wait (%p2072_p0), %s295_s19, 256  }
  0x7b   : > { %1487 = vsyncadd (%p2072_p0), %s295_s19, 4294967040  ;;  %p2073_p12 = scmp.eq.s32.totalorder %s1590_s25, 0 }
  0x7d   : > { %1489 = dma.done.wait (%p2073_p12), [#allocation6], 512   ;;  %p2074_p11 = pmov %p2073_p12 }
  0x7e   : > { %p346_p10 = scmp.lt.s32.totalorder %s1590_s25, 1  ;;  %v1521_v0 = vmov 0.0   ;;  %v351_v1 = vld [vmem:[%s289_s11] sm:$0xff]  ;;  %vm363_vm0 = vcmask 1043456   ;;  %s1522_s30 = smov 17   ;;  %v1530_v30 = vmov 0   ;;  %v366_v34 = vlaneseq }
  0x7f   : > { %1491 = vsyncadd (%p2074_p11), [#allocation6], 4294966784  ;;  %755 = vmatprep.mubr.f32.mxu0 %v1521_v0  ;;  %767 = vmatprep.mubr.f32.mxu1 %v1521_v0  ;;  %v355_v4 = vcombine.high %v351_v1, %v351_v1  ;;  %s1523_s17 = smov 15   ;;  %v558_v15 = vrot.slane %v1521_v0, 4  ;;  %s1524_s12 = smov 1   ;;  %v649_v29 = vld [vmem:[%s2052_s4 + $0x8] sm:$0xff] }
  0x80   : > { %s347_s8 = scalar_select %p346_p10, %s1590_s25, 1  ;;  %1285 = vset.pattern.permute.xlu0 %v1530_v30  ;;  %1286 = vset.pattern.permute.xlu1 %v1530_v30  ;;  %v648_v31 = vld [vmem:[%s2052_s4] sm:$0xff]  ;;  %v650_v32 = vld [vmem:[%s2052_s4 + $0x10] sm:$0xff]  ;;  %v651_v33 = vld [vmem:[%s2052_s4 + $0x18] sm:$0xff]  ;;  %v367_v35 = vand.u32 127, %v366_v34  ;;  %vm418_vm1 = vcmask 138240  }
  0x81   : > { %s1525_s10 = smov 16   ;;  %s1526_s7 = smov 127   ;;  %vm476_vm2 = vcmask 7168   ;;  %vm453_vm3 = vcmask 121856   ;;  %vm578_vm5 = vcmask 130048   ;;  %vm1531_vm9 = vmmov 1  }
  0x82   : > { %s1062_s18 = sshll.u32 %s347_s8, 4  ;;  %s1527_s15 = smov 113   ;;  %v368_v36 = vadd.s32 128, %v367_v35  ;;  %v373_v39 = vand.u32 15, %v367_v35  ;;  %vm499_vm14 = vcmask 1039360   ;;  %vm522_vm15 = vcmask 924672  }
  0x83   : > { %s350_s27 = scalar_lea.vmem %s2049_s1, %s1062_s18  ;;  %s1528_s11 = smov 112  }
  0x84   : > { %v353_v2 = vld [vmem:[%s350_s27 + $0x8] sm:$0xff]  ;;  %v352_v3 = vld [vmem:[%s350_s27] sm:$0xff]  ;;  %s1529_s0 = smov 111   ;;  %v380_v40 = vand.u32 15, %v368_v36  ;;  %v1821_v43 = vadd.s32 4294967295, %v373_v39  ;;  %v1829_v50 = vadd.s32 1, %v373_v39 }
  0x85   : > { %v1766_v5 = vrot.slane %v353_v2, 4  ;;  %v1768_v6 = vrot.slane %v352_v3, 4  ;;  %p2077_p3 = scmp.ne.s32.totalorder %s2067_s14, 0  ;;  %s1532_s8 = smov [#allocation9]  }
  0x86   : > { %v1823_v46 = vadd.s32 4294967295, %v380_v40  ;;  %v1827_v49 = vadd.s32 1, %v380_v40  ;;  %vm395_vm4 = vcmp.ge.s32.totalorder %v1821_v43, 0  ;;  %vm435_vm8 = vcmp.lt.s32.totalorder %v1829_v50, 16  ;;  %s1412_s18 = sshll.u32 %s1532_s8, 4  ;;  %s1413_s18 = int_to_ptr.vmem [resolvable:$false] %s1412_s18 }
  0x87   : > { %v1772_v7 = vsel %vm363_vm0, %v355_v4, %v1766_v5  ;;  %v1195_v8 = vpack.i.bf16 %v1766_v5, %v1768_v6  ;;  %v1778_v9 = vsel %vm363_vm0, %v351_v1, %v1768_v6  ;;  %v562_v13 = vrot.slane %v1768_v6, 4  ;;  %vm1069_vm11 = vmpackc.low %vm1531_vm9, %vm395_vm4  ;;  %s1414_s26 = scalar_lea.vmem %s1413_s18, 512 }
  0x88   : > { %412 = vrot.lane.b32.xlu1 %v1772_v7, %s1522_s30  ;;  %v1205_v10 = vpack.i.bf16 %v1772_v7, %v1778_v9  ;;  %v1200_v11 = vpack.i.bf16 %v1778_v9, %v1521_v0  ;;  %v559_v12 = vrot.slane %v1778_v9, 4  ;;  %v560_v14 = vrot.slane %v1772_v7, 4  ;;  %vm1075_vm13 = vmpackc.low %vm435_vm8, %vm1531_vm9 }
  0x89   : > { %1196 = vrot.lane.b32.xlu0 %v1195_v8, %s1522_s30  ;;  %v564_v17 = vrot.slane %v1766_v5, 4  ;;  %v1235_v21 = vpack.i.bf16 %v1768_v6, %v1521_v0  ;;  %v1245_v23 = vpack.i.bf16 %v1766_v5, %v1778_v9  ;;  %v1240_v24 = vpack.i.bf16 %v1521_v0, %v1772_v7 }
  0x8a   : > { %v563_v16 = vsel %vm363_vm0, %v559_v12, %v562_v13  ;;  %v1220_v18 = vpack.i.bf16 %v560_v14, %v559_v12  ;;  %v1260_v26 = vpack.i.bf16 %v558_v15, %v560_v14  ;;  %v1275_v27 = vpack.i.bf16 %v1766_v5, %v1521_v0 }
  0x8b   : > { %v1225_v19 = vpack.i.bf16 %v563_v16, %v558_v15  ;;  %v565_v20 = vsel %vm363_vm0, %v560_v14, %v564_v17  ;;  %v1280_v28 = vpack.i.bf16 %v1768_v6, %v1772_v7  ;;  %vm396_vm6 = vcmp.ge.s32.totalorder %v1823_v46, 0 }
  0x8c   : > { %1206 = vrot.lane.b32.xlu1 %v1205_v10, %s1523_s17  ;;  %v1230_v22 = vpack.i.bf16 %v558_v15, %v565_v20  ;;  %v1265_v25 = vpack.i.bf16 %v565_v20, %v559_v12  ;;  %vm436_vm7 = vcmp.lt.s32.totalorder %v1827_v49, 16  ;;  %vm1066_vm10 = vmpackc.low %vm1531_vm9, %vm396_vm6  ;;  %v645_v49 = vld [vmem:[#allocation7 + $0x8] sm:$0xff] }
  0x8d   : > { %1201 = vrot.lane.b32.xlu0 %v1200_v11, %s1522_s30  ;;  %vm1072_vm12 = vmpackc.low %vm436_vm7, %vm1531_vm9 }
  0x90   : > { %1211 = vrot.lane.b32.xlu1 %v1195_v8, %s1524_s12 }
  0x91   : > { %1216 = vrot.lane.b32.xlu0 %v1205_v10, %s1524_s12 }
  0x94   : > { %1221 = vrot.lane.b32.xlu1 %v1220_v18, %s1525_s10 }
  0x95   : > { %1226 = vrot.lane.b32.xlu0 %v1225_v19, %s1525_s10 }
  0x98   : > { %1236 = vrot.lane.b32.xlu1 %v1235_v21, %s1523_s17 }
  0x99   : > { %1231 = vrot.lane.b32.xlu0 %v1230_v22, %s1525_s10  ;;  %s345_s10 = scalar_lea.vmem [#allocation9], %s1748_s29 }
  0x9c   : > { %451 = vrot.lane.b32.xlu1 %v1766_v5, %s1523_s17 }
  0x9d   : > { %466 = vrot.lane.b32.xlu0 %v1521_v0, %s1524_s12  ;;  %s1063_s12 = sshll.u32 %s1590_s25, 8 }
  0xa0   : > { %1246 = vrot.lane.b32.xlu1 %v1245_v23, %s1526_s7 }
  0xa1   : > { %1241 = vrot.lane.b32.xlu0 %v1240_v24, %s1526_s7 }
  0xa4   : > { %1251 = vrot.lane.b32.xlu1 %v1240_v24, %s1527_s15 }
  0xa5   : > { %495 = vrot.lane.b32.xlu0 %v1768_v6, %s1526_s7  ;;  %s868_s7 = sshll.u32 %s345_s10, 4  ;;  %s1974_s7 = int_to_ptr.vmem [resolvable:$true] %s868_s7 }
  0xa6   : > { %s1408_s19 = scalar_lea.vmem %s1974_s7, 256  ;;  %p1415_p1 = scmp.lt.s32.totalorder %s1974_s7, %s1413_s18 }
  0xa7   : > { %p1409_p13 = scmp.ne.s32.totalorder %s1974_s7, %s1408_s19  ;;  %p1416_p5 = scmp.lt.s32.totalorder %s1414_s26, %s1408_s19 }
  0xa8   : > { %518 = vrot.lane.b32.xlu1 %v1768_v6, %s1527_s15 }
  0xa9   : > { %1256 = vrot.lane.b32.xlu0 %v1245_v23, %s1527_s15  ;;  %p1410_p7 = pnand %p1409_p13, %p2077_p3  ;;  %p1417_p2 = por %p1416_p5, %p1415_p1 }
  0xab   : > { %p1411_p9 = pneg %p1410_p7 }
  0xac   : > { %1266 = vrot.lane.b32.xlu1 %v1265_v25, %s1528_s11 }
  0xad   : > { %1261 = vrot.lane.b32.xlu0 %v1260_v26, %s1528_s11  ;;  %p1418_p6 = pnand %p1417_p2, %p1411_p9 }
  0xb0   : > { %1276 = vrot.lane.b32.xlu1 %v1275_v27, %s1529_s0 }
  0xb1   : > { %1271 = vrot.lane.b32.xlu0 %v1225_v19, %s1528_s11 }
  0xb4   : > { %535 = vrot.lane.b32.xlu1 %v1778_v9, %s1529_s0 }
  0xb5   : > { %1281 = vrot.lane.b32.xlu0 %v1280_v28, %s1529_s0  ;;  %s1972_s0 = scalar_lea.hbm %s2054_s6, %s1063_s12 }
  0xb8   : > { %659 = vperm.xlu1 %1286, %v649_v29  }
  0xb9   : > { %654 = vperm.xlu0 %1285, %v648_v31  }
  0xbc   : > { %664 = vperm.xlu1 %1286, %v650_v32  }
  0xbd   : > { %669 = vperm.xlu0 %1285, %v651_v33  }
  0xfa   : > { %v413_v37 = vpop.permute.xlu1 %412 }
  0xfb   : > { %v1197_v38 = vpop.permute.xlu0 %1196 }
  0xfc   : > { %v1199_v44 = vunpack.i.h.bf16 %v1197_v38  ;;  %v1198_v45 = vunpack.i.l.bf16 %v1197_v38 }
  0xfe   : > { %v1819_v41 = vpop.permute.xlu1 %1206  ;;  %v422_v57 = vsel %vm418_vm1, %v1198_v45, %v1199_v44 }
  0xff   : > { %v1202_v42 = vpop.permute.xlu0 %1201  ;;  %v1209_v62 = vunpack.i.h.bf16 %v1819_v41  ;;  %v1208_v4 = vunpack.i.l.bf16 %v1819_v41  ;;  %v430_v11 = vsel %vm396_vm6, %v422_v57, 0.0 }
 0x100   : > { %v1203_v47 = vunpack.i.l.bf16 %v1202_v42  ;;  %v1204_v54 = vunpack.i.h.bf16 %v1202_v42 }
 0x101   : > { %v455_v30 = vsel %vm453_vm3, %v1208_v4, %v1209_v62 }
 0x102   : > { %v1825_v48 = vpop.permute.xlu1 %1211  ;;  %v421_v59 = vsel %vm418_vm1, %v1203_v47, %v1198_v45  ;;  %v420_v10 = vsel %vm418_vm1, %v1204_v54, %v413_v37  ;;  %v419_v13 = vsel %vm418_vm1, %v1203_v47, %v1204_v54  ;;  %vm1920_vm1 = vmpackc.low %vm396_vm6, %vm1531_vm9 }
 0x103   : > { %v1214_v51 = vunpack.i.h.bf16 %v1825_v48  ;;  %v1213_v52 = vunpack.i.l.bf16 %v1825_v48  ;;  %v1833_v53 = vpop.permute.xlu0 %1216  ;;  %v429_v14 = vsel %vm395_vm4, %v421_v59, 0.0 }
 0x104   : > { %v1219_v55 = vunpack.i.h.bf16 %v1833_v53  ;;  %v1218_v56 = vunpack.i.l.bf16 %v1833_v53 }
 0x105   : > { %v480_v58 = vsel %vm476_vm2, %v1213_v52, %v1214_v51 }
 0x106   : > { %v1222_v60 = vpop.permute.xlu1 %1221  ;;  %v478_v61 = vsel %vm476_vm2, %v1218_v56, %v1219_v55  ;;  %v488_v3 = vsel %vm396_vm6, %v480_v58, 0.0 }
 0x107   : > { %v1224_v63 = vunpack.i.h.bf16 %v1222_v60  ;;  %v1223_v1 = vunpack.i.l.bf16 %v1222_v60  ;;  %v1227_v2 = vpop.permute.xlu0 %1226  ;;  %v486_v15 = vsel %vm396_vm6, %v478_v61, 0.0  ;;  %v595_v20 = vrot.slane %v488_v3, 4 }
 0x108   : > { %v1228_v8 = vunpack.i.l.bf16 %v1227_v2  ;;  %v1229_v16 = vunpack.i.h.bf16 %v1227_v2  ;;  %v592_v29 = vrot.slane %v486_v15, 4 }
 0x109   : > { %v580_v12 = vsel %vm578_vm5, %v1223_v1, %v1224_v63 }
 0x10a   : > { %v579_v17 = vsel %vm578_vm5, %v1228_v8, %v1223_v1  ;;  %v1237_v18 = vpop.permute.xlu1 %1236  ;;  %v637_v19 = vsel %vm363_vm0, %v430_v11, %v580_v12  ;;  %v596_v44 = vsel %vm363_vm0, %v592_v29, %v595_v20 }
 0x10b   : > { %v1239_v21 = vunpack.i.h.bf16 %v1237_v18  ;;  %v1238_v22 = vunpack.i.l.bf16 %v1237_v18  ;;  %v1232_v23 = vpop.permute.xlu0 %1231  ;;  %v1065_v24 = vpack.c.bf16 %v637_v19, %v420_v10  ;;  %v636_v25 = vsel %vm363_vm0, %v429_v14, %v579_v17 }
 0x10c   : > { %v1234_v26 = vunpack.i.h.bf16 %v1232_v23  ;;  %v1233_v27 = vunpack.i.l.bf16 %v1232_v23  ;;  %v1068_v28 = vpack.c.bf16 %v636_v25, %v419_v13 }
 0x10d   : > { %1067 = vmatprep.subr.msk.bf16.mxu0 %vm1066_vm10, %v1065_v24  ;;  %1101 = vmatprep.subr.msk.bf16.mxu1 %vm1066_vm10, %v1065_v24  ;;  %v454_v31 = vsel %vm453_vm3, %v1238_v22, %v1208_v4  ;;  %v456_v35 = vsel %vm453_vm3, %v1238_v22, %v1239_v21 }
 0x10e   : > { %v581_v32 = vsel %vm578_vm5, %v1234_v26, %v1229_v16  ;;  %v582_v33 = vsel %vm578_vm5, %v1229_v16, %v1233_v27  ;;  %v452_v34 = vpop.permute.xlu1 %451  ;;  %1070 = vmatpush1.bf16.msk.msra.mxu0 %vm1069_vm11, %v1068_v28  ;;  %1108 = vmatpush1.bf16.msk.msra.mxu1 %vm1069_vm11, %v1068_v28  ;;  %v464_v53 = vsel %vm435_vm8, %v456_v35, 0.0  ;;  %vm545_vm5 = vcmask 908288  }
 0x10f   : > { %v457_v36 = vsel %vm453_vm3, %v1239_v21, %v452_v34  ;;  %v467_v37 = vpop.permute.xlu0 %466  ;;  %v1071_v38 = vpack.c.bf16 %v455_v30, %v582_v33  ;;  %v1074_v39 = vpack.c.bf16 %v454_v31, %v581_v32  ;;  %vm1089_vm3 = vmpackc.low %vm395_vm4, %vm1531_vm9  ;;  %vm672_vm9 = vcmask 883712  }
 0x110   : > { %v465_v40 = vsel %vm436_vm7, %v457_v36, 0.0  ;;  %v477_v41 = vsel %vm476_vm2, %v467_v37, %v1218_v56  ;;  %v479_v42 = vsel %vm476_vm2, %v467_v37, %v1213_v52  ;;  %vm627_vm2 = vcmask 916480  }
 0x111   : > { %v485_v45 = vsel %vm395_vm4, %v477_v41, 0.0  ;;  %v487_v47 = vsel %vm395_vm4, %v479_v42, 0.0  ;;  %1073 = vmatprep.subr.msk.bf16.mxu0 %vm1072_vm12, %v1071_v38  ;;  %1102 = vmatprep.subr.msk.bf16.mxu1 %vm1072_vm12, %v1071_v38  ;;  %v639_v51 = vsel %vm363_vm0, %v465_v40, %v592_v29 }
 0x112   : > { %v591_v54 = vrot.slane %v485_v45, 4  ;;  %v593_v55 = vrot.slane %v487_v47, 4  ;;  %1076 = vmatpush1.bf16.msk.msra.mxu0 %vm1075_vm13, %v1074_v39  ;;  %1109 = vmatpush1.bf16.msk.msra.mxu1 %vm1075_vm13, %v1074_v39  ;;  %v1247_v48 = vpop.permute.xlu1 %1246  ;;  %v1077_v52 = vpack.c.bf16 %v596_v44, %v639_v51 }
 0x113   : > { %v1249_v56 = vunpack.i.h.bf16 %v1247_v48  ;;  %v1248_v57 = vunpack.i.l.bf16 %v1247_v48  ;;  %v1242_v58 = vpop.permute.xlu0 %1241 }
 0x114   : > { %v1244_v59 = vunpack.i.h.bf16 %v1242_v58  ;;  %v1243_v60 = vunpack.i.l.bf16 %v1242_v58  ;;  %1078 = vmatprep.subr.bf16.mxu0 %v1077_v52  ;;  %1103 = vmatprep.subr.bf16.mxu1 %v1077_v52  ;;  %v594_v61 = vsel %vm363_vm0, %v591_v54, %v593_v55  ;;  %v638_v62 = vsel %vm363_vm0, %v464_v53, %v591_v54 }
 0x115   : > { %v1079_v63 = vpack.c.bf16 %v594_v61, %v638_v62 }
 0x116   : > { %v1252_v1 = vpop.permute.xlu1 %1251  ;;  %v500_v2 = vsel %vm499_vm14, %v1248_v57, %v1243_v60  ;;  %v501_v3 = vsel %vm499_vm14, %v1243_v60, %v1244_v59  ;;  %v503_v4 = vsel %vm499_vm14, %v1249_v56, %v1244_v59 }
 0x117   : > { %v1254_v8 = vunpack.i.h.bf16 %v1252_v1  ;;  %v1253_v10 = vunpack.i.l.bf16 %v1252_v1  ;;  %v496_v11 = vpop.permute.xlu0 %495  ;;  %v508_v12 = vsel %vm435_vm8, %v500_v2, 0.0  ;;  %v511_v13 = vsel %vm436_vm7, %v503_v4, 0.0  ;;  %1080 = vmatpush1.bf16.msra.mxu0 %v1079_v63  ;;  %1110 = vmatpush1.bf16.msra.mxu1 %v1079_v63 }
 0x118   : > { %v502_v14 = vsel %vm499_vm14, %v496_v11, %v1249_v56  ;;  %v605_v15 = vrot.slane %v508_v12, 4  ;;  %v609_v16 = vrot.slane %v511_v13, 4  ;;  %v509_v17 = vsel %vm436_vm7, %v501_v3, 0.0  ;;  %v644_v11 = vld [vmem:[#allocation7] sm:$0xff]  ;;  %v646_v12 = vld [vmem:[#allocation7 + $0x10] sm:$0xff]  ;;  %v647_v13 = vld [vmem:[#allocation7 + $0x18] sm:$0xff] }
 0x119   : > { %v510_v18 = vsel %vm435_vm8, %v502_v14, 0.0  ;;  %v606_v19 = vrot.slane %v509_v17, 4  ;;  %v524_v23 = vsel %vm522_vm15, %v1253_v10, %v1254_v8 }
 0x11a   : > { %v607_v20 = vrot.slane %v510_v18, 4  ;;  %v519_v21 = vpop.permute.xlu1 %518  ;;  %v640_v22 = vsel %vm363_vm0, %v1768_v6, %v605_v15 }
 0x11b   : > { %v1257_v24 = vpop.permute.xlu0 %1256  ;;  %v641_v25 = vsel %vm363_vm0, %v1766_v5, %v606_v19  ;;  %v1083_v26 = vpack.c.bf16 %v640_v22, %v1778_v9  ;;  %v610_v27 = vsel %vm363_vm0, %v606_v19, %v609_v16 }
 0x11c   : > { %v1258_v28 = vunpack.i.l.bf16 %v1257_v24  ;;  %v1081_v29 = vpack.c.bf16 %v641_v25, %v1772_v7  ;;  %v608_v6 = vsel %vm363_vm0, %v605_v15, %v607_v20  ;;  %v1259_v31 = vunpack.i.h.bf16 %v1257_v24 }
 0x11d   : > { %v1085_v9 = vpack.c.bf16 %v524_v23, %v610_v27 }
 0x11e   : > { %v523_v32 = vsel %vm522_vm15, %v1258_v28, %v1253_v10  ;;  %1082 = vmatprep.subr.bf16.mxu0 %v1081_v29  ;;  %1104 = vmatprep.subr.bf16.mxu1 %v1081_v29  ;;  %v1267_v5 = vpop.permute.xlu1 %1266  ;;  %v525_v37 = vsel %vm522_vm15, %v519_v21, %v1259_v31  ;;  %v526_v38 = vsel %vm522_vm15, %v1259_v31, %v1254_v8 }
 0x11f   : > { %v1088_v33 = vpack.c.bf16 %v523_v32, %v608_v6  ;;  %1084 = vmatpush1.bf16.msra.mxu0 %v1083_v26  ;;  %1111 = vmatpush1.bf16.msra.mxu1 %v1083_v26  ;;  %v1268_v7 = vunpack.i.l.bf16 %v1267_v5  ;;  %v1262_v34 = vpop.permute.xlu0 %1261  ;;  %v1269_v39 = vunpack.i.h.bf16 %v1267_v5  ;;  %v534_v54 = vsel %vm396_vm6, %v526_v38, 0.0  ;;  %vm1099_vm6 = vmpackc.low %vm363_vm0, %vm435_vm8 }
 0x120   : > { %v1264_v35 = vunpack.i.h.bf16 %v1262_v34  ;;  %v1263_v36 = vunpack.i.l.bf16 %v1262_v34  ;;  %1087 = vmatprep.subr.msk.bf16.mxu0 %vm1920_vm1, %v1085_v9  ;;  %1105 = vmatprep.subr.msk.bf16.mxu1 %vm1920_vm1, %v1085_v9  ;;  %v533_v55 = vsel %vm395_vm4, %v525_v37, 0.0  ;;  %vm1096_vm4 = vmpackc.low %vm363_vm0, %vm436_vm7 }
 0x122   : > { %v1277_v40 = vpop.permute.xlu1 %1276  ;;  %v628_v41 = vsel %vm627_vm2, %v1268_v7, %v1263_v36  ;;  %v629_v42 = vsel %vm627_vm2, %v1263_v36, %v1264_v35 }
 0x123   : > { %1090 = vmatpush1.bf16.msk.msra.mxu0 %vm1089_vm3, %v1088_v33  ;;  %1112 = vmatpush1.bf16.msk.msra.mxu1 %vm1089_vm3, %v1088_v33  ;;  %v1272_v44 = vpop.permute.xlu0 %1271  ;;  %v1279_v45 = vunpack.i.h.bf16 %v1277_v40  ;;  %v1278_v47 = vunpack.i.l.bf16 %v1277_v40  ;;  %v643_v56 = vsel %vm363_vm0, %v534_v54, %v629_v42  ;;  %v642_v58 = vsel %vm363_vm0, %v533_v55, %v628_v41  ;;  %v818_v54 = vld [vmem:[%s298_s20] sm:$0xff] }
 0x124   : > { %v1274_v51 = vunpack.i.h.bf16 %v1272_v44  ;;  %v1273_v53 = vunpack.i.l.bf16 %v1272_v44 }
 0x125   : > { %v549_v48 = vsel %vm545_vm5, %v1279_v45, %v1278_v47 }
 0x126   : > { %v631_v52 = vsel %vm627_vm2, %v1269_v39, %v1273_v53  ;;  %v630_v57 = vsel %vm627_vm2, %v1274_v51, %v1269_v39  ;;  %v536_v60 = vpop.permute.xlu1 %535  ;;  %v557_v43 = vsel %vm436_vm7, %v549_v48, 0.0 }
 0x127   : > { %v1282_v59 = vpop.permute.xlu0 %1281  ;;  %v1091_v61 = vpack.c.bf16 %v631_v52, %v643_v56  ;;  %v1093_v62 = vpack.c.bf16 %v630_v57, %v642_v58  ;;  %v819_v57 = vld [vmem:[%s298_s20 + $0x8] sm:$0xff]  ;;  %s840_s20 = scalar_lea.sflag [#allocation10], %s1738_s3 }
 0x128   : > { %v1284_v63 = vunpack.i.h.bf16 %v1282_v59  ;;  %v1283_v46 = vunpack.i.l.bf16 %v1282_v59 }
 0x129   : > { %1092 = vmatprep.subr.bf16.mxu0 %v1091_v61  ;;  %1106 = vmatprep.subr.bf16.mxu1 %v1091_v61 }
 0x12a   : > { %v546_v1 = vsel %vm545_vm5, %v536_v60, %v1283_v46  ;;  %v548_v2 = vsel %vm545_vm5, %v1284_v63, %v1279_v45  ;;  %1094 = vmatpush1.bf16.msra.mxu0 %v1093_v62  ;;  %1113 = vmatpush1.bf16.msra.mxu1 %v1093_v62  ;;  %v547_v3 = vsel %vm545_vm5, %v1283_v46, %v1278_v47 }
 0x12b   : > { %v556_v4 = vsel %vm435_vm8, %v548_v2, 0.0  ;;  %v1095_v8 = vpack.c.bf16 %v557_v43, %v547_v3 }
 0x12c   : > { %v1098_v10 = vpack.c.bf16 %v556_v4, %v546_v1 }
 0x12d   : > { %1097 = vmatprep.subr.msk.bf16.mxu0 %vm1096_vm4, %v1095_v8  ;;  %1107 = vmatprep.subr.msk.bf16.mxu1 %vm1096_vm4, %v1095_v8 }
 0x12e   : > { %1100 = vmatpush1.bf16.msk.msra.mxu0 %vm1099_vm6, %v1098_v10  ;;  %1114 = vmatpush1.bf16.msk.msra.mxu1 %vm1099_vm6, %v1098_v10 }
 0x131   : > { %1042 = vmatmul.mubr.msk.f32.vlgmr.msra.gmra.mrb[0].mxu0 %vm672_vm9, %v644_v11  ;;  %1044 = vmatmul.mubr.msk.f32.vlgmr.msra.gmra.mrb[0].mxu1 %vm672_vm9, %v646_v12 }
 0x132   : > { %761 = vmatprep.mubr.f32.mxu0 %v1521_v0  ;;  %773 = vmatprep.mubr.f32.mxu1 %v1521_v0 }
 0x135   : > { %1043 = vmatmul.mubr.msk.f32.gmra.mrb[2].mxu0 %vm672_vm9, %v645_v49  ;;  %1045 = vmatmul.mubr.msk.f32.gmra.mrb[2].mxu1 %vm672_vm9, %v647_v13 }
 0x137   : > { %v660_v50 = vpop.permute.xlu1 %659 }
 0x138   : > { %v655_v14 = vpop.permute.xlu0 %654 }
 0x13b   : > { %v665_v22 = vpop.permute.xlu1 %664 }
 0x13c   : > { %v670_v31 = vpop.permute.xlu0 %669 }
 0x204   : > { %v757_v15 = vpop.f32.mrb[0].mxu0  ;;  %v769_v16 = vpop.f32.mrb[0].mxu1 }
 0x205   : > { %v758_v17 = vadd.f32 %v757_v15, %v655_v14  ;;  %v759_v18 = vpop.f32.mrb[1].mxu0  ;;  %v771_v19 = vpop.f32.mrb[1].mxu1  ;;  %v770_v30 = vadd.f32 %v769_v16, %v665_v22 }
 0x206   : > { %v760_v20 = vadd.f32 %v759_v18, %v655_v14  ;;  %v772_v9 = vadd.f32 %v771_v19, %v665_v22 }
 0x207   : > { %v1046_v21 = vmul.f32 -1.442695, %v758_v17  ;;  %v1050_v32 = vmul.f32 -1.442695, %v770_v30 }
 0x208   : > { %v1047_v23 = vmul.f32 -1.442695, %v760_v20  ;;  %v763_v24 = vpop.f32.mrb[2].mxu0  ;;  %v775_v25 = vpop.f32.mrb[2].mxu1  ;;  %v1051_v37 = vmul.f32 -1.442695, %v772_v9 }
 0x209   : > { %1288 = vpow2.f32 %v1046_v21  ;;  %v764_v26 = vadd.f32 %v763_v24, %v660_v50  ;;  %v765_v0 = vpop.f32.mrb[3].mxu0  ;;  %v777_v27 = vpop.f32.mrb[3].mxu1  ;;  %v776_v5 = vadd.f32 %v775_v25, %v670_v31 }
 0x20a   : > { %1290 = vpow2.f32 %v1047_v23  ;;  %v766_v28 = vadd.f32 %v765_v0, %v660_v50  ;;  %v778_v33 = vadd.f32 %v777_v27, %v670_v31 }
 0x20b   : > { %v1048_v29 = vmul.f32 -1.442695, %v764_v26 }
 0x20c   : > { %v1049_v6 = vmul.f32 -1.442695, %v766_v28 }
 0x20d   : > { %1292 = vpow2.f32 %v1048_v29 }
 0x20e   : > { %1294 = vpow2.f32 %v1049_v6 }
 0x20f   : > { %1296 = vpow2.f32 %v1050_v32 }
 0x210   : > { %1298 = vtanh.f32 %v776_v5 }
 0x211   : > { %1300 = vtanh.f32 %v778_v33 }
 0x213   : > { %v1289_v7 = vpop.eup %1288 }
 0x214   : > { %v1291_v34 = vpop.eup %1290  ;;  %v786_v35 = vadd.f32 1.0, %v1289_v7 }
 0x215   : > { %v787_v36 = vadd.f32 1.0, %v1291_v34 }
 0x216   : > { %1302 = vrcp.f32 %v786_v35 }
 0x217   : > { %v1293_v38 = vpop.eup %1292  ;;  %1304 = vrcp.f32 %v787_v36 }
 0x218   : > { %v798_v39 = vadd.f32 1.0, %v1293_v38  ;;  %v1295_v40 = vpop.eup %1294  ;;  %1306 = vpow2.f32 %v1051_v37 }
 0x219   : > { %v799_v41 = vadd.f32 1.0, %v1295_v40  ;;  %v1297_v42 = vpop.eup %1296 }
 0x21a   : > { %1308 = vrcp.f32 %v798_v39  ;;  %v1299_v44 = vpop.eup %1298  ;;  %v810_v56 = vadd.f32 1.0, %v1297_v42 }
 0x21b   : > { %1310 = vrcp.f32 %v799_v41  ;;  %v1301_v45 = vpop.eup %1300 }
 0x21c   : > { %1312 = vrcp.f32 %v810_v56 }
 0x220   : > { %v1303_v47 = vpop.eup %1302 }
 0x221   : > { %v1305_v51 = vpop.eup %1304  ;;  %v822_v53 = vmul.f32 %v1303_v47, %v1299_v44 }
 0x222   : > { %v823_v55 = vmul.f32 %v1305_v51, %v1301_v45  ;;  %v1307_v48 = vpop.eup %1306 }
 0x223   : > { %v811_v60 = vadd.f32 1.0, %v1307_v48 }
 0x224   : > { %v1309_v52 = vpop.eup %1308 }
 0x225   : > { %v820_v58 = vmul.f32 %v1309_v52, %v818_v54  ;;  %v1311_v59 = vpop.eup %1310 }
 0x226   : > { %v821_v62 = vmul.f32 %v1311_v59, %v819_v57 }
 0x227   : > { %v824_v61 = vadd.f32 %v822_v53, %v820_v58 }
 0x228   : > { %v825_v63 = vadd.f32 %v823_v55, %v821_v62 }
 0x229   : > { %1314 = vtanh.f32 %v824_v61  ;;  %832 = vst [vmem:[%s345_s10] sm:$0xff] %v824_v61 }
 0x22a   : > { %1316 = vrcp.f32 %v811_v60  ;;  %833 = vst [vmem:[%s345_s10 + $0x8] sm:$0xff] %v825_v63 }
 0x22b   : > { %1318 = vtanh.f32 %v825_v63 }
 0x22c   : > { %1421 = shalt.err (!%p1418_p6)
}
 0x22d   : > { %s1422_s16 = scalar_lea.hbm %s1972_s0, 256  ;;  %s1426_s17 = scalar_lea.hbm %s2054_s6, 512 }
 0x22e   : > { %p1423_p8 = scmp.ne.s32.totalorder %s1972_s0, %s1422_s16  ;;  %p1427_p12 = scmp.lt.u32.totalorder %s1972_s0, %s2054_s6 }
 0x22f   : > { %p1428_p11 = scmp.lt.u32.totalorder %s1426_s17, %s1422_s16  ;;  %p1430_p13 = scmp.lt.u32.totalorder %s1422_s16, %s1972_s0 }
 0x230   : > { %p1424_p4 = pnand %p1423_p8, %p2077_p3 }
 0x231   : > { %p1429_p10 = por %p1428_p11, %p1427_p12 }
 0x232   : > { %p1425_p0 = pneg %p1424_p4 }
 0x233   : > { %p1431_p7 = por %p1430_p13, %p1429_p10 }
 0x235   : > { %p1432_p9 = pnand %p1431_p7, %p1425_p0 }
 0x237   : > { %1435 = shalt.err (!%p1432_p9)
}
 0x238   : > { %1124 = dma.vmem_to_hbm [thread:$0]  (%p2077_p3), %s1974_s7, 256, %s1972_s0, %s840_s20   ;;  %v1313_v46 = vpop.eup %1312 }
 0x239   : > { %v1315_v43 = vpop.eup %1314  ;;  %s338_s11 = scalar_lea.vmem [#allocation8], %s1748_s29  ;;  %s2004_s26 = scalar_lea.hbm %s2053_s5, %s1063_s12 }
 0x23a   : > { %s854_s19 = sshll.u32 %s338_s11, 4  ;;  %v1317_v1 = vpop.eup %1316  ;;  %v828_v2 = vmul.f32 %v1315_v43, %v1313_v46  ;;  %s835_s7 = scalar_lea.sflag [#allocation4], %s1738_s3  ;;  %s2006_s19 = int_to_ptr.vmem [resolvable:$true] %s854_s19 }
 0x23b   : > { %v1319_v3 = vpop.eup %1318  ;;  %s1436_s29 = scalar_lea.vmem %s2006_s19, 256  ;;  %s1533_s0 = smov [#allocation8]  }
 0x23c   : > { %v829_v4 = vmul.f32 %v1319_v3, %v1317_v1  ;;  %830 = vst [vmem:[%s338_s11] sm:$0xff] %v828_v2  ;;  %p1437_p1 = scmp.ne.s32.totalorder %s2006_s19, %s1436_s29  ;;  %s1440_s20 = sshll.u32 %s1533_s0, 4  ;;  %s1441_s20 = int_to_ptr.vmem [resolvable:$false] %s1440_s20 }
 0x23d   : > { %s1442_s25 = scalar_lea.vmem %s1441_s20, 512  ;;  %p1443_p6 = scmp.lt.s32.totalorder %s2006_s19, %s1441_s20 }
 0x23e   : > { %831 = vst [vmem:[%s338_s11 + $0x8] sm:$0xff] %v829_v4  ;;  %p1438_p5 = pnand %p1437_p1, %p2077_p3  ;;  %p1444_p8 = scmp.lt.s32.totalorder %s1442_s25, %s1436_s29 }
 0x240   : > { %p1439_p2 = pneg %p1438_p5  ;;  %p1445_p4 = por %p1444_p8, %p1443_p6 }
 0x242   : > { %p1446_p0 = pnand %p1445_p4, %p1439_p2 }
 0x244   : > { %1449 = shalt.err (!%p1446_p0)
}
 0x245   : > { %s1450_s3 = scalar_lea.hbm %s2004_s26, 256  ;;  %s1454_s27 = scalar_lea.hbm %s2053_s5, 512 }
 0x246   : > { %p1451_p12 = scmp.ne.s32.totalorder %s2004_s26, %s1450_s3  ;;  %p1455_p13 = scmp.lt.u32.totalorder %s2004_s26, %s2053_s5 }
 0x247   : > { %p1456_p7 = scmp.lt.u32.totalorder %s1454_s27, %s1450_s3  ;;  %p1458_p1 = scmp.lt.u32.totalorder %s1450_s3, %s2004_s26 }
 0x248   : > { %p1452_p11 = pnand %p1451_p12, %p2077_p3 }
 0x249   : > { %p1457_p9 = por %p1456_p7, %p1455_p13 }
 0x24a   : > { %p1453_p10 = pneg %p1452_p11 }
 0x24b   : > { %p1459_p5 = por %p1458_p1, %p1457_p9 }
 0x24d   : > { %p1460_p2 = pnand %p1459_p5, %p1453_p10 }
 0x24f   : > { %1463 = shalt.err (!%p1460_p2)
}
 0x250   : > { %1123 = dma.vmem_to_hbm [thread:$0]  (%p2077_p3), %s2006_s19, 256, %s2004_s26, %s835_s7  }
 0x251 PF: > { %s880_s10 = sand.u32 1, %s1502_s21   ;;  %p2078_p6 = scmp.ne.s32.totalorder %s2062_s28, 0 }
 0x252   : > { %p2079_p8 = scmp.ge.s32.totalorder %s1514_s24, 2  ;;  %s881_s15 = scalar_lea.sflag [#allocation4], %s880_s10 }
 0x254   : > { %p1139_p4 = pnand %p2079_p8, %p2078_p6 }
 0x256   : > { %1493 = dma.done.wait (!%p1139_p4), %s881_s15, 256  }
 0x257   : > { %1495 = vsyncadd (!%p1139_p4), %s881_s15, 4294967040  ;;  %s890_s11 = scalar_lea.sflag [#allocation10], %s880_s10 }
 0x258   : > { %1497 = dma.done.wait (!%p1139_p4), %s890_s11, 256  }
 0x259   : > { %1499 = vsyncadd (!%p1139_p4), %s890_s11, 4294967040  ;;  %p26_p3 = scmp.ge.s32.totalorder %s1625_s9, 4   ;;  %s2080_s21 = smov %s1506_s22 }
 0x25a   : > { %s2081_s22 = smov %s1510_s23  ;;  %s2082_s23 = smov %s1656_s13 }
 0x25b   : > { %s2083_s24 = smov %s1625_s9  ;;  %28 = sbr.rel (!%p26_p3) target bundleno = 12 (0xc), region = 122 }
 0x262   :  { %895 = vsyncpa [#allocation3], 1 }
 0x263   :  { %897 = vsyncpa [#allocation3 + $0x1], 1 }
 0x264   :  { %898 = vsyncpa [#allocation6], 1 }
 0x265   :  { %900 = vsyncpa [#allocation6 + $0x1], 1 }
 0x266   :  { %901 = vsyncpa [#allocation4], 1 }
 0x267   :  { %903 = vsyncpa [#allocation4 + $0x1], 1 }
 0x268   :  { %904 = vsyncpa [#allocation10], 1 }
 0x269   :  { %906 = vsyncpa [#allocation10 + $0x1], 1 }

</bundles_post_ra>
